<compile_context>
chip_gen: v5e
topology: v5e:2x2
jax: 0.10.0
libtpu: 0.0.40
codegen_flags: <defaults>
</compile_context>

<pallas_src>
import math

import jax
import jax.numpy as jnp
from jax import lax
from jax.experimental import pallas as pl
from jax.experimental.pallas import tpu as pltpu

INPUT_DIM = 64
HIDDEN_DIM = 32


def _round_up(x, m):
    return ((x + m - 1) // m) * m


def _tpu_generation():
    """Best-effort TPU generation sniff (5 / 6 / 7); defaults to 6."""
    try:
        kind = jax.devices()[0].device_kind.lower()
    except Exception:
        return 6
    for gen in (7, 6, 5):
        if f"v{gen}" in kind:
            return gen
    return 6


def disc_kernel(x_ref, w1_ref, b1_ref, w2_ref, b2_ref, o_ref):
    """Fused Linear -> ReLU -> Linear -> sigmoid on one tile of batch rows.

    x_ref : [TM, 64] (native dtype)   w1_ref : [64, 32] bf16   b1_ref : [1, 32] f32
    w2_ref: [1, 32] bf16              b2_ref : [1, 1] f32 (SMEM)
    o_ref : [1, TM] f32 (lane-dense row)
    """
    # Cast activations to bf16 on the VPU (free) so the first matmul takes the
    # native bf16 MXU path instead of multi-pass f32 emulation; accumulate f32.
    x = x_ref[...].astype(jnp.bfloat16)
    h = jnp.dot(x, w1_ref[...], preferred_element_type=jnp.float32)
    h = jnp.maximum(h + b1_ref[...], 0.0)                       # [TM, 32] f32

    # dis2, transposed orientation: (1,32) . (TM,32)^T -> (1,TM).
    # Keeps the result lane-major (no 1-wide sublane column, no masked partial
    # stores, contiguous writeback DMA).
    y = lax.dot_general(
        w2_ref[...], h.astype(jnp.bfloat16),
        dimension_numbers=(((1,), (1,)), ((), ())),
        preferred_element_type=jnp.float32,
    )
    y = y + b2_ref[0, 0]
    o_ref[...] = jax.nn.sigmoid(y).astype(o_ref.dtype)


def init_params(key, input_dim=INPUT_DIM, hidden_dim=HIDDEN_DIM):
    """Deterministic PyTorch-style (Kaiming-uniform) Linear initialization."""
    k1, k2, k3, k4 = jax.random.split(key, 4)
    bound1 = 1.0 / math.sqrt(input_dim)
    bound2 = 1.0 / math.sqrt(hidden_dim)
    w1 = jax.random.uniform(k1, (input_dim, hidden_dim), jnp.float32, -bound1, bound1)
    b1 = jax.random.uniform(k2, (1, hidden_dim), jnp.float32, -bound1, bound1)
    # dis2 weight kept in PyTorch's native (out=1, in=32) row layout.
    w2_row = jax.random.uniform(k3, (1, hidden_dim), jnp.float32, -bound2, bound2)
    b2 = jax.random.uniform(k4, (1, 1), jnp.float32, -bound2, bound2)
    return w1, b1, w2_row, b2


def discriminator_forward(x, params, *, block_rows=None):
    """Pallas forward pass.

    block_rows: batch rows per grid step (rounded up to a multiple of 128).
    Note: distinct (n, tm) combinations compile distinct kernels — bucket batch
    sizes in production to avoid per-N recompiles.
    """
    w1, b1, w2_row, b2 = params

    # glue: x.view(-1, 64). Keep the NATIVE dtype — no wrapper-side astype, so
    # no extra HBM round trip; the kernel casts to bf16 in-register.
    xf = x.reshape(-1, INPUT_DIM)
    n = xf.shape[0]
    if n == 0:
        return jnp.zeros((0, 1), jnp.float32)

    gen = _tpu_generation()
    if block_rows is None:
        # Sized so the HBM transfer of one x tile amortizes the ~0.35us
        # per-grid-step overhead on each generation.
        block_rows = {5: 4096, 6: 8192, 7: 16384}[gen]
    # Multiple of 128 so the [1, TM] output row stays lane-dense (unmasked vst).
    block_rows = max(128, _round_up(block_rows, 128))

    tm = min(block_rows, _round_up(n, 128))
    if gen >= 7 and n > 128:
        # v7x has 2 TensorCores: keep grid_n >= 2 so ("parallel",) shards
        # batch tiles across both cores instead of idling one.
        tm = min(tm, max(128, _round_up(pl.cdiv(n, 2), 128)))
    grid_n = pl.cdiv(n, tm)

    # bf16 weight residents for the MXU (tiny one-off casts outside the kernel).
    w1_bf = w1.astype(jnp.bfloat16)
    w2_bf = w2_row.astype(jnp.bfloat16)

    itemsize = jnp.dtype(xf.dtype).itemsize
    cost = pl.CostEstimate(
        flops=2 * n * INPUT_DIM * HIDDEN_DIM + 2 * n * HIDDEN_DIM,
        transcendentals=n,
        bytes_accessed=(n * INPUT_DIM * itemsize            # x stream
                        + n * 4                             # output
                        + (INPUT_DIM + 2) * HIDDEN_DIM * 2  # bf16 weights + b1-ish
                        + 4),                               # b2
    )

    # Scoped-VMEM headroom per generation (v5e defaults to only 16 MiB scoped;
    # v7x physical VMEM is 64 MiB per TC).
    vmem_limit = {5: 32 << 20, 6: 64 << 20, 7: 48 << 20}[gen]

    out = pl.pallas_call(
        disc_kernel,
        out_shape=jax.ShapeDtypeStruct((grid_n, tm), jnp.float32),
        grid=(grid_n,),
        in_specs=[
            pl.BlockSpec((tm, INPUT_DIM), lambda i: (i, 0)),           # x tile (pipelined)
            pl.BlockSpec((INPUT_DIM, HIDDEN_DIM), lambda i: (0, 0)),   # w1 (VMEM-resident)
            pl.BlockSpec((1, HIDDEN_DIM), lambda i: (0, 0)),           # b1 (VMEM-resident)
            pl.BlockSpec((1, HIDDEN_DIM), lambda i: (0, 0)),           # w2 row (VMEM-resident)
            pl.BlockSpec(memory_space=pltpu.MemorySpace.SMEM),         # b2 scalar (SMEM)
        ],
        out_specs=pl.BlockSpec((1, tm), lambda i: (i, 0)),
        compiler_params=pltpu.CompilerParams(
            dimension_semantics=("parallel",),   # shards batch tiles across TCs on v7x
            vmem_limit_bytes=vmem_limit,
        ),
        cost_estimate=cost,
    )(xf, w1_bf, b1, w2_bf, b2)

    # (grid_n, tm) row-major is exactly batch order; drop ragged tail rows.
    # (Math is strictly per-row, so garbage tail rows never contaminate valid
    #  outputs before being sliced off.)
    return out.reshape(-1, 1)[:n]


def reference_forward(x, params):
    """Pure-JAX f32 reference for correctness check."""
    w1, b1, w2_row, b2 = params
    xf = x.reshape(-1, INPUT_DIM).astype(jnp.float32)
    h = jnp.maximum(xf @ w1 + b1, 0.0)
    return jax.nn.sigmoid(h @ w2_row.T + b2)


if __name__ == "__main__":
    key = jax.random.PRNGKey(0)
    pkey, xkey = jax.random.split(key)
    params = init_params(pkey)

    # Small input; any shape whose flatten gives (-1, 64) works.
    # (2, 72, 64) -> 144 rows.
    x = jax.random.normal(xkey, (2, 72, 64), jnp.float32)

    ref = reference_forward(x, params)

    # 1) Default, generation-tuned tiling (single or dual-tile grid).
    out = discriminator_forward(x, params)
    jax.block_until_ready(out)
    assert out.shape == (144, 1), out.shape
    assert jnp.allclose(out, ref, atol=2e-2, rtol=2e-2), float(
        jnp.max(jnp.abs(out - ref))
    )

    # 2) Tiny tile: exercises a multi-step grid including a ragged last tile
    #    and the lane-dense [1, TM] output path.
    out2 = discriminator_forward(x, params, block_rows=128)
    jax.block_until_ready(out2)
    assert out2.shape == (144, 1), out2.shape
    assert jnp.allclose(out2, ref, atol=2e-2, rtol=2e-2), float(
        jnp.max(jnp.abs(out2 - ref))
    )

    print("KERNEL_OK")
</pallas_src>

<mosaic_0001>
module attributes {stable_mosaic.version = 11 : i64} {
  func.func @disc_kernel(%arg0: i32, %arg1: memref<256x64xf32, #tpu.memory_space<vmem>>, %arg2: memref<64x32xbf16, #tpu.memory_space<vmem>>, %arg3: memref<1x32xf32, #tpu.memory_space<vmem>>, %arg4: memref<1x32xbf16, #tpu.memory_space<vmem>>, %arg5: memref<1x1xf32, #tpu.memory_space<smem>>, %arg6: memref<1x256xf32, #tpu.memory_space<vmem>>) attributes {dimension_semantics = [#tpu.dimension_semantics<parallel>], iteration_bounds = array<i64: 1>, scalar_prefetch = 0 : i64, scratch_operands = 0 : i64, tpu.core_type = #tpu.core_type<tc>, window_params = [{transform_indices = @transform_0, window_bounds = array<i64: 256, 64>}, {pipeline_mode = #tpu.pipeline_mode<synchronous>, transform_indices = @transform_1, window_bounds = array<i64: 64, 32>}, {pipeline_mode = #tpu.pipeline_mode<synchronous>, transform_indices = @transform_2, window_bounds = array<i64: 1, 32>}, {pipeline_mode = #tpu.pipeline_mode<synchronous>, transform_indices = @transform_3, window_bounds = array<i64: 1, 32>}, {transform_indices = @transform_4, window_bounds = array<i64: 1, 1>}, {transform_indices = @transform_5, window_bounds = array<i64: 1, 256>}]} {
    %c0 = arith.constant 0 : index
    %c0_0 = arith.constant 0 : index
    %0 = vector.load %arg1[%c0, %c0_0] : memref<256x64xf32, #tpu.memory_space<vmem>>, vector<256x64xf32>
    %1 = arith.truncf %0 : vector<256x64xf32> to vector<256x64xbf16>
    %c0_1 = arith.constant 0 : index
    %c0_2 = arith.constant 0 : index
    %2 = vector.load %arg2[%c0_1, %c0_2] : memref<64x32xbf16, #tpu.memory_space<vmem>>, vector<64x32xbf16>
    %cst = arith.constant dense<0.000000e+00> : vector<256x32xf32>
    %3 = tpu.matmul %1, %2, %cst {dimension_numbers = #tpu.dot_dimension_numbers<[1], [0], [0], [1], [0, 0, 1, 1], [], []>} : vector<256x64xbf16>, vector<64x32xbf16>, vector<256x32xf32> -> vector<256x32xf32>
    %c0_3 = arith.constant 0 : index
    %c0_4 = arith.constant 0 : index
    %4 = vector.load %arg3[%c0_3, %c0_4] : memref<1x32xf32, #tpu.memory_space<vmem>>, vector<1x32xf32>
    %5 = vector.broadcast %4 : vector<1x32xf32> to vector<256x32xf32>
    %6 = arith.addf %3, %5 : vector<256x32xf32>
    %cst_5 = arith.constant 0.000000e+00 : f32
    %7 = vector.broadcast %cst_5 : f32 to vector<256x32xf32>
    %8 = arith.maximumf %6, %7 : vector<256x32xf32>
    %c0_6 = arith.constant 0 : index
    %c0_7 = arith.constant 0 : index
    %9 = vector.load %arg4[%c0_6, %c0_7] : memref<1x32xbf16, #tpu.memory_space<vmem>>, vector<1x32xbf16>
    %10 = arith.truncf %8 : vector<256x32xf32> to vector<256x32xbf16>
    %cst_8 = arith.constant dense<0.000000e+00> : vector<1x256xf32>
    %11 = tpu.matmul %9, %10, %cst_8 {dimension_numbers = #tpu.dot_dimension_numbers<[1], [1], [0], [0], [0, 0, 1, 0], [], []>} : vector<1x32xbf16>, vector<256x32xbf16>, vector<1x256xf32> -> vector<1x256xf32>
    %c0_9 = arith.constant 0 : index
    %c0_10 = arith.constant 0 : index
    %12 = memref.load %arg5[%c0_9, %c0_10] : memref<1x1xf32, #tpu.memory_space<smem>>
    %13 = vector.broadcast %12 : f32 to vector<1x256xf32>
    %14 = arith.addf %11, %13 : vector<1x256xf32>
    %15 = arith.negf %14 : vector<1x256xf32>
    %16 = math.exp %15 : vector<1x256xf32>
    %cst_11 = arith.constant 1.000000e+00 : f32
    %17 = vector.broadcast %cst_11 : f32 to vector<1x256xf32>
    %18 = arith.addf %17, %16 : vector<1x256xf32>
    %19 = arith.divf %17, %18 : vector<1x256xf32>
    %c0_12 = arith.constant 0 : index
    %c0_13 = arith.constant 0 : index
    %20 = vector.load %arg6[%c0_12, %c0_13] : memref<1x256xf32, #tpu.memory_space<vmem>>, vector<1x256xf32>
    tpu.vector_store %arg6[%c0_12, %c0_13], %19 {strides = array<i32>} : memref<1x256xf32, #tpu.memory_space<vmem>>, vector<1x256xf32>,
    return
  }
  func.func @transform_0(%arg0: i32) -> (i32, i32) {
    %c0_i32 = arith.constant 0 : i32
    %c0_i32_0 = arith.constant 0 : i32
    return %arg0, %c0_i32 : i32, i32
  }
  func.func @transform_1(%arg0: i32) -> (i32, i32) {
    %c0_i32 = arith.constant 0 : i32
    %c0_i32_0 = arith.constant 0 : i32
    %c0_i32_1 = arith.constant 0 : i32
    return %c0_i32, %c0_i32_0 : i32, i32
  }
  func.func @transform_2(%arg0: i32) -> (i32, i32) {
    %c0_i32 = arith.constant 0 : i32
    %c0_i32_0 = arith.constant 0 : i32
    %c0_i32_1 = arith.constant 0 : i32
    return %c0_i32, %c0_i32_0 : i32, i32
  }
  func.func @transform_3(%arg0: i32) -> (i32, i32) {
    %c0_i32 = arith.constant 0 : i32
    %c0_i32_0 = arith.constant 0 : i32
    %c0_i32_1 = arith.constant 0 : i32
    return %c0_i32, %c0_i32_0 : i32, i32
  }
  func.func @transform_4(%arg0: i32) -> (i32, i32) {
    %c0_i32 = arith.constant 0 : i32
    %c0_i32_0 = arith.constant 0 : i32
    %c0_i32_1 = arith.constant 0 : i32
    return %c0_i32, %c0_i32_0 : i32, i32
  }
  func.func @transform_5(%arg0: i32) -> (i32, i32) {
    %c0_i32 = arith.constant 0 : i32
    %c0_i32_0 = arith.constant 0 : i32
    return %arg0, %c0_i32 : i32, i32
  }
}

</mosaic_0001>

<bundles_post_ra>
// kernel: tpu_custom_call.1
= control target key start
LH: loop header
LB: loop body
LE: loop exit
PB: predicated region body
PF: predicated region fallthrough
CT: control target
= control target key end

     0   :  { %s763_s0 = inlined_call_operand.vmem [shape: f32[144,64], index: 0, kind: input, shape index: {}]   ;;  %s764_s1 = inlined_call_operand.vmem [shape: bf16[64,32], index: 1, kind: input, shape index: {}]   ;;  %s765_s2 = inlined_call_operand.vmem [shape: f32[1,32], index: 2, kind: input, shape index: {}]   ;;  %s766_s3 = inlined_call_operand.vmem [shape: bf16[1,32], index: 3, kind: input, shape index: {}]   ;;  %s767_s4 = inlined_call_operand.<no memory space> [shape: f32[1,1], index: 4, kind: input, shape index: {}]   ;;  %s768_s5 = inlined_call_operand.hbm [shape: f32[1,256], index: 5, kind: output, shape index: {}]  }
   0x1   :  { %v478_v0 = vld [vmem:[%s764_s1 + $0x18] sm:$0xff]  ;;  %v477_v1 = vld [vmem:[%s764_s1 + $0x10] sm:$0xff] }
   0x2   :  { %160 = vmatpush.bf16.msra.mxu0 %v478_v0  ;;  %480 = vmatpush.bf16.msra.mxu3 %v478_v0 }
   0x3   :  { %479 = vmatpush.bf16.msra.mxu1 %v478_v0 }
   0x4   :  { %11 = vsyncpa [#allocation4], 0  ;;  %v476_v2 = vld [vmem:[%s764_s1 + $0x8] sm:$0xff]  ;;  %v475_v3 = vld [vmem:[%s764_s1] sm:$0xff]  ;;  %vm107_vm0 = vcmask 523264   ;;  %vm296_vm1 = vcmask 261120  }
   0x5   :  { %v23_v4 = vld [vmem:[%s763_s0] sm:$0xff]  ;;  %v24_v5 = vld [vmem:[%s763_s0 + $0x8] sm:$0xff]  ;;  %v25_v13 = vld [vmem:[%s763_s0 + $0x10] sm:$0xff]  ;;  %s430_s18 = sshll.u32 %s768_s5, 4  ;;  %vm415_vm10 = vcmask 1040384   ;;  %s431_s18 = int_to_ptr.hbm [resolvable:$true] %s430_s18 }
   0x6   :  { %161 = vmatpush.bf16.msra.mxu0 %v477_v1  ;;  %482 = vmatpush.bf16.msra.mxu3 %v477_v1  ;;  %v43_v6 = vld [vmem:[%s763_s0 + $0xa0] sm:$0xff]  ;;  %v44_v7 = vld [vmem:[%s763_s0 + $0xa8] sm:$0xff]  ;;  %v55_v8 = vpack.c.bf16 %v24_v5, %v23_v4  ;;  %v26_v14 = vld [vmem:[%s763_s0 + $0x18] sm:$0xff] }
   0x7   :  { %481 = vmatpush.bf16.msra.mxu1 %v477_v1  ;;  %v65_v9 = vpack.c.bf16 %v44_v7, %v43_v6  ;;  %v35_v10 = vld [vmem:[%s763_s0 + $0x60] sm:$0xff]  ;;  %v36_v11 = vld [vmem:[%s763_s0 + $0x68] sm:$0xff]  ;;  %v45_v15 = vld [vmem:[%s763_s0 + $0xb0] sm:$0xff]  ;;  %v56_v17 = vpack.c.bf16 %v26_v14, %v25_v13 }
   0x8   :  { %v61_v12 = vpack.c.bf16 %v36_v11, %v35_v10  ;;  %v46_v16 = vld [vmem:[%s763_s0 + $0xb8] sm:$0xff]  ;;  %v37_v19 = vld [vmem:[%s763_s0 + $0x70] sm:$0xff]  ;;  %v27_v22 = vld [vmem:[%s763_s0 + $0x20] sm:$0xff] }
   0x9   :  { %v66_v18 = vpack.c.bf16 %v46_v16, %v45_v15  ;;  %v38_v20 = vld [vmem:[%s763_s0 + $0x78] sm:$0xff]  ;;  %v28_v23 = vld [vmem:[%s763_s0 + $0x28] sm:$0xff]  ;;  %v47_v24 = vld [vmem:[%s763_s0 + $0xc0] sm:$0xff] }
   0xa   :  { %162 = vmatpush.bf16.msra.mxu0 %v476_v2  ;;  %484 = vmatpush.bf16.msra.mxu3 %v476_v2  ;;  %v62_v21 = vpack.c.bf16 %v38_v20, %v37_v19  ;;  %v48_v25 = vld [vmem:[%s763_s0 + $0xc8] sm:$0xff]  ;;  %v57_v26 = vpack.c.bf16 %v28_v23, %v27_v22  ;;  %v29_v28 = vld [vmem:[%s763_s0 + $0x30] sm:$0xff]  ;;  %v30_v29 = vld [vmem:[%s763_s0 + $0x38] sm:$0xff] }
   0xb   :  { %483 = vmatpush.bf16.msra.mxu1 %v476_v2  ;;  %v67_v27 = vpack.c.bf16 %v48_v25, %v47_v24  ;;  %v49_v30 = vld [vmem:[%s763_s0 + $0xd0] sm:$0xff]  ;;  %v50_v31 = vld [vmem:[%s763_s0 + $0xd8] sm:$0xff]  ;;  %v58_v32 = vpack.c.bf16 %v30_v29, %v29_v28  ;;  %v39_v34 = vld [vmem:[%s763_s0 + $0x80] sm:$0xff] }
   0xc   :  { %v68_v33 = vpack.c.bf16 %v50_v31, %v49_v30  ;;  %v40_v35 = vld [vmem:[%s763_s0 + $0x88] sm:$0xff]  ;;  %v31_v37 = vld [vmem:[%s763_s0 + $0x40] sm:$0xff]  ;;  %v33_v43 = vld [vmem:[%s763_s0 + $0x50] sm:$0xff] }
   0xd   :  { %v63_v36 = vpack.c.bf16 %v40_v35, %v39_v34  ;;  %v32_v38 = vld [vmem:[%s763_s0 + $0x48] sm:$0xff]  ;;  %v51_v39 = vld [vmem:[%s763_s0 + $0xe0] sm:$0xff]  ;;  %v34_v44 = vld [vmem:[%s763_s0 + $0x58] sm:$0xff] }
   0xe   :  { %163 = vmatpush.bf16.msra.mxu0 %v475_v3  ;;  %486 = vmatpush.bf16.msra.mxu3 %v475_v3  ;;  %v52_v40 = vld [vmem:[%s763_s0 + $0xe8] sm:$0xff]  ;;  %v59_v41 = vpack.c.bf16 %v32_v38, %v31_v37  ;;  %v53_v45 = vld [vmem:[%s763_s0 + $0xf0] sm:$0xff]  ;;  %v54_v46 = vld [vmem:[%s763_s0 + $0xf8] sm:$0xff]  ;;  %v60_v47 = vpack.c.bf16 %v34_v44, %v33_v43 }
   0xf   :  { %485 = vmatpush.bf16.msra.mxu1 %v475_v3  ;;  %v69_v42 = vpack.c.bf16 %v52_v40, %v51_v39  ;;  %v70_v48 = vpack.c.bf16 %v54_v46, %v53_v45  ;;  %v41_v49 = vld [vmem:[%s763_s0 + $0x90] sm:$0xff]  ;;  %v42_v50 = vld [vmem:[%s763_s0 + $0x98] sm:$0xff]  ;;  %v681_v53 = vld [vmem:[%s765_s2] ss:$0 sm:$0xff] }
  0x10   :  { %v64_v51 = vpack.c.bf16 %v42_v50, %v41_v49 }
  0x11   :  { %455 = vmatmul.msk.bf16.vlgmr.msra.gmra.mxu0 %vm107_vm0, %v55_v8  ;;  %465 = vmatmul.msk.bf16.vlgmr.msra.gmra.mxu3 %vm107_vm0, %v65_v9 }
  0x12   :  { %461 = vmatmul.msk.bf16.vlgmr.msra.gmra.mxu1 %vm107_vm0, %v61_v12 }
  0x21   :  { %456 = vmatmul.msk.bf16.gmra.mxu0 %vm107_vm0, %v56_v17  ;;  %466 = vmatmul.msk.bf16.gmra.mxu3 %vm107_vm0, %v66_v18 }
  0x22   :  { %462 = vmatmul.msk.bf16.gmra.mxu1 %vm107_vm0, %v62_v21 }
  0x31   :  { %457 = vmatmul.msk.bf16.gmra.mxu0 %vm107_vm0, %v57_v26  ;;  %467 = vmatmul.msk.bf16.gmra.mxu3 %vm107_vm0, %v67_v27 }
  0x32   :  { %463 = vmatmul.msk.bf16.gmra.mxu1 %vm107_vm0, %v63_v36 }
  0x41   :  { %458 = vmatmul.msk.bf16.gmra.mxu0 %vm107_vm0, %v58_v32  ;;  %468 = vmatmul.msk.bf16.gmra.mxu3 %vm107_vm0, %v68_v33 }
  0x42   :  { %464 = vmatmul.msk.bf16.gmra.mxu1 %vm107_vm0, %v64_v51 }
  0x51   :  { %459 = vmatmul.msk.bf16.gmra.mxu0 %vm107_vm0, %v59_v41  ;;  %469 = vmatmul.msk.bf16.gmra.mxu3 %vm107_vm0, %v69_v42 }
  0x61   :  { %460 = vmatmul.msk.bf16.gmra.mxu0 %vm107_vm0, %v60_v47  ;;  %470 = vmatmul.msk.bf16.gmra.mxu3 %vm107_vm0, %v70_v48 }
  0x8e   :  { %v165_v52 = vpop.f32.mrf.mxu0 }
  0x8f   :  { %v166_v54 = vadd.f32 %v681_v53, %v165_v52  ;;  %v195_v60 = vpop.f32.mrf.mxu1 }
  0x90   :  { %v196_v32 = vadd.f32 %v681_v53, %v195_v60 }
  0x91   :  { %v245_v57 = vmax.f32 %v166_v54, 0.0 }
  0x92   :  { %v257_v39 = vmax.f32 %v196_v32, 0.0 }
  0x94   :  { %v215_v55 = vpop.f32.mrf.mxu3 }
  0x95   :  { %v216_v61 = vadd.f32 %v681_v53, %v215_v55 }
  0x96   :  { %v167_v56 = vpop.f32.mrf.mxu0 }
  0x97   :  { %v168_v58 = vadd.f32 %v681_v53, %v167_v56  ;;  %v265_v2 = vmax.f32 %v216_v61, 0.0  ;;  %v197_v4 = vpop.f32.mrf.mxu1 }
  0x98   :  { %v198_v33 = vadd.f32 %v681_v53, %v197_v4 }
  0x99   :  { %v246_v59 = vmax.f32 %v168_v58, 0.0 }
  0x9a   :  { %v258_v41 = vmax.f32 %v198_v33, 0.0 }
  0x9b   :  { %v686_v62 = vpack.c.bf16 %v246_v59, %v245_v57 }
  0x9c   :  { %v217_v63 = vpop.f32.mrf.mxu3  ;;  %v284_v45 = vpack.c.bf16 %v258_v41, %v257_v39 }
  0x9d   :  { %v218_v0 = vadd.f32 %v681_v53, %v217_v63 }
  0x9e   :  { %v170_v1 = vpop.f32.mrf.mxu0  ;;  %v319_v47 = vsel %vm296_vm1, %v284_v45, 0  ;;  %v301_v45 = vsel %vm296_vm1, %v686_v62, 0 }
  0x9f   :  { %v266_v3 = vmax.f32 %v218_v0, 0.0  ;;  %v171_v6 = vadd.f32 %v681_v53, %v170_v1  ;;  %v200_v12 = vpop.f32.mrf.mxu1 }
  0xa0   :  { %v201_v20 = vadd.f32 %v681_v53, %v200_v12 }
  0xa1   :  { %v689_v5 = vpack.c.bf16 %v266_v3, %v265_v2  ;;  %v247_v9 = vmax.f32 %v171_v6, 0.0 }
  0xa2   :  { %v259_v26 = vmax.f32 %v201_v20, 0.0 }
  0xa4   :  { %v220_v7 = vpop.f32.mrf.mxu3 }
  0xa5   :  { %v221_v13 = vadd.f32 %v681_v53, %v220_v7 }
  0xa6   :  { %v172_v8 = vpop.f32.mrf.mxu0 }
  0xa7   :  { %v173_v10 = vadd.f32 %v681_v53, %v172_v8  ;;  %v267_v18 = vmax.f32 %v221_v13, 0.0  ;;  %v202_v21 = vpop.f32.mrf.mxu1 }
  0xa8   :  { %v203_v23 = vadd.f32 %v681_v53, %v202_v21 }
  0xa9   :  { %v248_v11 = vmax.f32 %v173_v10, 0.0 }
  0xaa   :  { %v260_v27 = vmax.f32 %v203_v23, 0.0 }
  0xab   :  { %v694_v14 = vpack.c.bf16 %v248_v11, %v247_v9 }
  0xac   :  { %v222_v15 = vpop.f32.mrf.mxu3  ;;  %v285_v34 = vpack.c.bf16 %v260_v27, %v259_v26 }
  0xad   :  { %v223_v16 = vadd.f32 %v681_v53, %v222_v15 }
  0xae   :  { %v175_v17 = vpop.f32.mrf.mxu0  ;;  %v322_v36 = vsel %vm296_vm1, %v285_v34, 0 }
  0xaf   :  { %v268_v19 = vmax.f32 %v223_v16, 0.0  ;;  %v176_v24 = vadd.f32 %v681_v53, %v175_v17  ;;  %348 = vmatpush.bf16.xpose.msrb.mxu1 %v322_v36  ;;  %v205_v26 = vpop.f32.mrf.mxu1 }
  0xb1   :  { %v698_v22 = vpack.c.bf16 %v268_v19, %v267_v18  ;;  %v249_v29 = vmax.f32 %v176_v24, 0.0 }
  0xb4   :  { %v225_v25 = vpop.f32.mrf.mxu3 }
  0xb5   :  { %v226_v35 = vadd.f32 %v681_v53, %v225_v25 }
  0xb6   :  { %v177_v28 = vpop.f32.mrf.mxu0 }
  0xb7   :  { %v178_v30 = vadd.f32 %v681_v53, %v177_v28  ;;  %v269_v43 = vmax.f32 %v226_v35, 0.0  ;;  %349 = vmatpush.bf16.xpose.msrb.mxu1 %v319_v47  ;;  %v207_v36 = vpop.f32.mrf.mxu1 }
  0xb8   :  { %v208_v62 = vadd.f32 %v681_v53, %v207_v36 }
  0xb9   :  { %v250_v31 = vmax.f32 %v178_v30, 0.0 }
  0xbb   :  { %v707_v37 = vpack.c.bf16 %v250_v31, %v249_v29 }
  0xbc   :  { %v227_v38 = vpop.f32.mrf.mxu3 }
  0xbd   :  { %v228_v40 = vadd.f32 %v681_v53, %v227_v38  ;;  %v307_v39 = vsel %vm296_vm1, %v707_v37, 0 }
  0xbe   :  { %v180_v42 = vpop.f32.mrf.mxu0 }
  0xbf   :  { %v270_v44 = vmax.f32 %v228_v40, 0.0  ;;  %v181_v13 = vadd.f32 %v681_v53, %v180_v42  ;;  %v210_v40 = vpop.f32.mrf.mxu1  ;;  %v304_v42 = vsel %vm296_vm1, %v694_v14, 0 }
  0xc0   :  { %v211_v37 = vadd.f32 %v681_v53, %v210_v40 }
  0xc1   :  { %v290_v46 = vpack.c.bf16 %v270_v44, %v269_v43  ;;  %v251_v21 = vmax.f32 %v181_v13, 0.0  ;;  %v334_v43 = vsel %vm296_vm1, %v698_v22, 0  ;;  %v206_v22 = vadd.f32 %v681_v53, %v205_v26 }
  0xc3   :  { %v337_v41 = vsel %vm296_vm1, %v290_v46, 0  ;;  %v277_v46 = vld [vmem:[%s766_s3] sm:$0x1] }
  0xc4   :  { %v230_v48 = vpop.f32.mrf.mxu3 }
  0xc5   :  { %v231_v29 = vadd.f32 %v681_v53, %v230_v48  ;;  %v263_v48 = vmax.f32 %v211_v37, 0.0 }
  0xc6   :  { %v182_v49 = vpop.f32.mrf.mxu0 }
  0xc7   :  { %v183_v15 = vadd.f32 %v681_v53, %v182_v49  ;;  %v271_v33 = vmax.f32 %v231_v29, 0.0  ;;  %v212_v44 = vpop.f32.mrf.mxu1  ;;  %v331_v49 = vsel %vm296_vm1, %v689_v5, 0 }
  0xc8   :  { %v213_v47 = vadd.f32 %v681_v53, %v212_v44 }
  0xc9   :  { %v252_v23 = vmax.f32 %v183_v15, 0.0 }
  0xca   :  { %v264_v14 = vmax.f32 %v213_v47, 0.0 }
  0xcb   :  { %v281_v30 = vpack.c.bf16 %v252_v23, %v251_v21  ;;  %v418_v23 = vlaneseq }
  0xcc   :  { %v232_v50 = vpop.f32.mrf.mxu3 }
  0xcd   :  { %v233_v27 = vadd.f32 %v681_v53, %v232_v50  ;;  %v310_v34 = vsel %vm296_vm1, %v281_v30, 0  ;;  %v287_v50 = vpack.c.bf16 %v264_v14, %v263_v48  ;;  %vm420_vm11 = vcmp.lt.s32.totalorder %v418_v23, 256 }
  0xce   :  { %v185_v51 = vpop.f32.mrf.mxu0 }
  0xcf   :  { %v186_v63 = vadd.f32 %v681_v53, %v185_v51  ;;  %v272_v31 = vmax.f32 %v233_v27, 0.0  ;;  %v261_v51 = vmax.f32 %v206_v22, 0.0 }
  0xd1   :  { %v253_v6 = vmax.f32 %v186_v63, 0.0  ;;  %v291_v35 = vpack.c.bf16 %v272_v31, %v271_v33 }
  0xd3   :  { %v340_v38 = vsel %vm296_vm1, %v291_v35, 0 }
  0xd4   :  { %v235_v52 = vpop.f32.mrf.mxu3 }
  0xd5   :  { %v236_v16 = vadd.f32 %v681_v53, %v235_v52  ;;  %v262_v52 = vmax.f32 %v208_v62, 0.0 }
  0xd6   :  { %v187_v54 = vpop.f32.mrf.mxu0 }
  0xd7   :  { %v188_v0 = vadd.f32 %v681_v53, %v187_v54  ;;  %v273_v24 = vmax.f32 %v236_v16, 0.0  ;;  %v328_v54 = vsel %vm296_vm1, %v287_v50, 0 }
  0xd9   :  { %v254_v7 = vmax.f32 %v188_v0, 0.0 }
  0xdb   :  { %v282_v18 = vpack.c.bf16 %v254_v7, %v253_v6 }
  0xdc   :  { %v237_v55 = vpop.f32.mrf.mxu3 }
  0xdd   :  { %v238_v10 = vadd.f32 %v681_v53, %v237_v55  ;;  %v313_v25 = vsel %vm296_vm1, %v282_v18, 0  ;;  %v286_v55 = vpack.c.bf16 %v262_v52, %v261_v51 }
  0xde   :  { %v190_v56 = vpop.f32.mrf.mxu0 }
  0xdf   :  { %v191_v57 = vadd.f32 %v681_v53, %v190_v56  ;;  %v274_v19 = vmax.f32 %v238_v10, 0.0  ;;  %v325_v56 = vsel %vm296_vm1, %v286_v55, 0 }
  0xe1   :  { %v255_v60 = vmax.f32 %v191_v57, 0.0  ;;  %v292_v28 = vpack.c.bf16 %v274_v19, %v273_v24  ;;  %v295_v57 = vstv %s767_s4  ;;  %s523_s4 = smov [#allocation3]  }
  0xe2   :  { %s428_s15 = sshll.u32 %s523_s4, 4  ;;  %s429_s15 = int_to_ptr.vmem [resolvable:$true] %s428_s15 }
  0xe3   :  { %v343_v32 = vsel %vm296_vm1, %v292_v28, 0 }
  0xe4   :  { %v240_v58 = vpop.f32.mrf.mxu3 }
  0xe5   :  { %v241_v2 = vadd.f32 %v681_v53, %v240_v58 }
  0xe6   :  { %v192_v59 = vpop.f32.mrf.mxu0 }
  0xe7   :  { %v193_v61 = vadd.f32 %v681_v53, %v192_v59  ;;  %v275_v11 = vmax.f32 %v241_v2, 0.0 }
  0xe9   :  { %v256_v1 = vmax.f32 %v193_v61, 0.0 }
  0xeb   :  { %v283_v3 = vpack.c.bf16 %v256_v1, %v255_v60 }
  0xec   :  { %v242_v4 = vpop.f32.mrf.mxu3 }
  0xed   :  { %v243_v8 = vadd.f32 %v681_v53, %v242_v4  ;;  %v316_v9 = vsel %vm296_vm1, %v283_v3, 0 }
  0xee   :  { %350 = vmatpush.bf16.xpose.msrb.mxu1 %v316_v9 }
  0xef   :  { %v276_v12 = vmax.f32 %v243_v8, 0.0 }
  0xf1   :  { %v293_v17 = vpack.c.bf16 %v276_v12, %v275_v11 }
  0xf3   :  { %v346_v20 = vsel %vm296_vm1, %v293_v17, 0 }
  0xf4   :  { %361 = vmatpush.bf16.xpose.msra.mxu2 %v346_v20 }
  0xf6   :  { %351 = vmatpush.bf16.xpose.msrb.mxu1 %v313_v25 }
  0xfc   :  { %362 = vmatpush.bf16.xpose.msra.mxu2 %v343_v32 }
  0xfe   :  { %352 = vmatpush.bf16.xpose.msrb.mxu1 %v310_v34 }
 0x104   :  { %363 = vmatpush.bf16.xpose.msra.mxu2 %v340_v38 }
 0x106   :  { %353 = vmatpush.bf16.xpose.msrb.mxu1 %v307_v39 }
 0x10c   :  { %364 = vmatpush.bf16.xpose.msra.mxu2 %v337_v41 }
 0x10e   :  { %354 = vmatpush.bf16.xpose.msrb.mxu1 %v304_v42 }
 0x114   :  { %365 = vmatpush.bf16.xpose.msra.mxu2 %v334_v43 }
 0x116   :  { %355 = vmatpush.bf16.xpose.msrb.mxu1 %v301_v45 }
 0x11c   :  { %366 = vmatpush.bf16.xpose.msra.mxu2 %v331_v49 }
 0x11d   :  { %471 = vmatmul.msk.bf16.vlgmr.msrb.gmra.mxu1 %vm296_vm1, %v277_v46 }
 0x124   :  { %367 = vmatpush.bf16.xpose.msra.mxu2 %v328_v54 }
 0x12c   :  { %368 = vmatpush.bf16.xpose.msra.mxu2 %v325_v56 }
 0x133   :  { %472 = vmatmul.msk.bf16.vlgmr.msra.gmra.mxu2 %vm296_vm1, %v277_v46 }
 0x19a   :  { %v357_v5 = vpop.f32.mrf.mxu1 }
 0x19b   :  { %v358_v59 = vadd.f32 %v357_v5, %v295_v57 }
 0x19d   :  { %v473_v53 = vmul.f32 -1.442695, %v358_v59 }
 0x19f   :  { %489 = vpow2.f32 %v473_v53 }
 0x1a2   :  { %v359_v58 = vpop.f32.mrf.mxu1 }
 0x1a5   :  { %v490_v60 = vpop.eup %489 }
 0x1a6   :  { %v380_v61 = vadd.f32 1.0, %v490_v60 }
 0x1a8   :  { %491 = vrcp.f32 %v380_v61  ;;  %vm387_vm2 = vweird.f32 %v380_v61  ;;  %v391_v13 = vand.u32 2147483647, %v380_v61  ;;  %v393_v15 = vand.u32 2147483648, %v380_v61 }
 0x1aa   :  { %v394_v24 = vor.u32 1.1754944e-38, %v393_v15  ;;  %vm392_vm8 = vcmp.eq.f32.partialorder %v391_v13, 8.507059e+37 }
 0x1ae   :  { %v492_v3 = vpop.eup %491 }
 0x1af   :  { %v383_v7 = vmul.f32 %v492_v3, %v380_v61  ;;  %vm388_vm3 = vweird.f32 %v492_v3 }
 0x1b0   :  { %vm754_vm5 = vmor %vm387_vm2, %vm388_vm3 }
 0x1b1   :  { %v384_v8 = vsub.f32 1.0, %v383_v7 }
 0x1b3   :  { %v385_v11 = vmul.f32 %v492_v3, %v384_v8 }
 0x1b5   :  { %v386_v17 = vadd.f32 %v492_v3, %v385_v11 }
 0x1b6   :  { %v370_v63 = vpop.f32.mrf.mxu2 }
 0x1b7   :  { %v371_v0 = vadd.f32 %v370_v63, %v295_v57  ;;  %v390_v26 = vsel %vm754_vm5, %v492_v3, %v386_v17 }
 0x1b8   :  { %v395_v30 = vsel %vm392_vm8, %v394_v24, %v390_v26 }
 0x1b9   :  { %v474_v1 = vmul.f32 -1.442695, %v371_v0 }
 0x1bb   :  { %493 = vpow2.f32 %v474_v1 }
 0x1be   :  { %v372_v2 = vpop.f32.mrf.mxu2 }
 0x1c1   :  { %v494_v4 = vpop.eup %493 }
 0x1c2   :  { %v381_v6 = vadd.f32 1.0, %v494_v4 }
 0x1c4   :  { %495 = vrcp.f32 %v381_v6  ;;  %v408_v16 = vand.u32 2147483648, %v381_v6  ;;  %v406_v19 = vand.u32 2147483647, %v381_v6  ;;  %vm402_vm6 = vweird.f32 %v381_v6 }
 0x1c6   :  { %v409_v25 = vor.u32 1.1754944e-38, %v408_v16  ;;  %vm407_vm9 = vcmp.eq.f32.partialorder %v406_v19, 8.507059e+37 }
 0x1ca   :  { %v496_v9 = vpop.eup %495 }
 0x1cb   :  { %v398_v10 = vmul.f32 %v496_v9, %v381_v6  ;;  %vm403_vm4 = vweird.f32 %v496_v9 }
 0x1cc   :  { %vm404_vm7 = vmor %vm402_vm6, %vm403_vm4 }
 0x1cd   :  { %v399_v12 = vsub.f32 1.0, %v398_v10 }
 0x1cf   :  { %v400_v18 = vmul.f32 %v496_v9, %v399_v12 }
 0x1d1   :  { %v401_v21 = vadd.f32 %v496_v9, %v400_v18 }
 0x1d3   :  { %v405_v27 = vsel %vm404_vm7, %v496_v9, %v401_v21 }
 0x1d4   :  { %v410_v28 = vsel %vm407_vm9, %v409_v25, %v405_v27 }
 0x1d5   :  { %v414_v29 = vrot.slane %v410_v28, 7 }
 0x1d7   :  { %v416_v31 = vsel %vm415_vm10, %v395_v30, %v414_v29 }
 0x1d8   :  { %422 = vst.msk [vmem:[#allocation3] sm:$0x3] %vm420_vm11, %v416_v31 }
 0x1d9   :  { %433 = dma.vmem_to_hbm [thread:$0]  %s429_s15, 32, %s431_s18, [#allocation4]  }
 0x1da   :  { %521 = dma.done.wait [#allocation4], 32  }
 0x1db   :  { %522 = vsyncadd [#allocation4], 4294967264 }
 0x1dc   :  { %438 = vsyncpa [#allocation4], 1 }

</bundles_post_ra>
